<compile_context>
chip_gen: v7x
topology: tpu7x:2x2x1
jax: 0.10.0
libtpu: 0.0.40
codegen_flags: <defaults>
</compile_context>

<pallas_src>
import functools

import jax
import jax.numpy as jnp
from jax.experimental import pallas as pl
from jax.experimental.pallas import tpu as pltpu


# ---------------------------------------------------------------------------
# One-time probe of pltpu.roll's shift convention.  The slab build needs
# result[j] = x[j + off]; under the numpy convention (result[j] =
# x[(j - shift) % n]) that is shift = n - off, under the opposite convention
# it is shift = off.  A tiny probe kernel pins this down once at runtime so
# the main kernel is convention-proof across jax versions.
_ROLL_IS_NUMPY_CONVENTION = None


def _roll_is_numpy_convention():
    global _ROLL_IS_NUMPY_CONVENTION
    if _ROLL_IS_NUMPY_CONVENTION is None:
        def probe(x_ref, o_ref):
            o_ref[...] = pltpu.roll(x_ref[...], shift=1, axis=1)

        x = jax.lax.broadcasted_iota(jnp.float32, (8, 256), 1)
        got = pl.pallas_call(
            probe, out_shape=jax.ShapeDtypeStruct((8, 256), jnp.float32))(x)
        _ROLL_IS_NUMPY_CONVENTION = bool(
            jnp.allclose(got, jnp.roll(x, 1, axis=1)))
    return _ROLL_IS_NUMPY_CONVENTION


# ---------------------------------------------------------------------------
def _resblock_kernel(x_ref, wbig_ref, bbig_ref, wf_ref, bf_ref,
                     out_sum_ref, out_ref, slab_ref,
                     *, uoffs, NB, L, Lp, F, C_in_pad, use_bf16, roll_numpy):
    lanes = NB * Lp
    x0 = x_ref[...]                                   # (C_in_pad, lanes) f32

    # Build the im2col slab tap-by-tap into VMEM scratch.  Each tap is one
    # lane rotation (runs in the otherwise-idle XLU slot) of the same
    # full-width, lane-aligned tile.  Within every batch's Lp-wide segment the
    # useful first L lanes read x[:, j + off]; the wrapped lanes only land in
    # the discarded tail (off <= Lp - L), so batches never mix.
    for t, off in enumerate(uoffs):                   # static unroll (taps)
        if off == 0:
            shifted = x0
        else:
            shift = (lanes - off) if roll_numpy else off
            shifted = pltpu.roll(x0, shift=shift, axis=1)
        slab_ref[t * C_in_pad:(t + 1) * C_in_pad, :] = (
            shifted.astype(slab_ref.dtype))

    # One fused MXU matmul for conv1 / conv2 / 1x1 residual conv.
    y = jnp.dot(wbig_ref[...], slab_ref[...],
                preferred_element_type=jnp.float32) + bbig_ref[...]
    cat = y[:2 * F]                                   # (2F, lanes) = [y1; y2]
    x_res = y[2 * F:]                                 # (F,  lanes)

    # ELU (alpha=1) in f32; expm1 for accuracy, min() so the unselected branch
    # cannot overflow.
    act = jnp.where(cat > 0, cat, jnp.expm1(jnp.minimum(cat, 0.0)))
    # TODO(synk): spatial dropout (Dropout2d) is identity here (eval mode).
    if use_bf16:
        act = act.astype(jnp.bfloat16)

    out = jnp.dot(wf_ref[...], act,
                  preferred_element_type=jnp.float32) + bf_ref[...]
    out_sum = out + x_res

    # Lane-aligned per-batch stores (n * Lp is a multiple of 128).
    for n in range(NB):                               # static unroll
        out_ref[n] = out[:, n * Lp:n * Lp + L].astype(out_ref.dtype)
        out_sum_ref[n] = out_sum[:, n * Lp:n * Lp + L].astype(out_sum_ref.dtype)


def residual_block_forward(x, params, *, kernel_size, dilation,
                           use_bf16=False, batch_block=None):
    """x: (N, C_in, L) float32.  Returns (out + x_res, out), each (N, F, L)."""
    N, C_in, L = x.shape
    F = params["res_w"].shape[0]
    K = kernel_size
    # PyTorch padding='same' with dilation only splits evenly for odd K.
    assert K % 2 == 1, "kernel_size must be odd for padding='same' semantics"
    d1, d2 = dilation, dilation * 2
    pad1 = d1 * (K - 1) // 2
    pad2 = d2 * (K - 1) // 2
    pmax = pad2

    # Pad channels to a full sublane tile (8 for f32, 16 for the bf16 slab).
    sub = 16 if use_bf16 else 8
    C_in_pad = ((C_in + sub - 1) // sub) * sub

    # Per-batch padded length rounded to a lane multiple so every batch's
    # segment inside the merged lane axis is lane-aligned.
    Lp = ((L + 2 * pmax + 127) // 128) * 128

    # Channel-major, batches-merged-into-lanes layout (C_in_pad, N*Lp): one
    # fused XLA pad + transpose + reshape.
    # TODO(synk): in a full TCN stack, keep x persistently in this layout
    # instead of re-laying it out once per residual block.
    x_pad = jnp.pad(x, ((0, 0), (0, C_in_pad - C_in), (pmax, Lp - pmax - L)))
    x2d = jnp.transpose(x_pad, (1, 0, 2)).reshape(C_in_pad, N * Lp)

    # Static tap offsets (into each batch's padded segment), deduplicated.
    offs1 = [pmax - pad1 + k * d1 for k in range(K)]
    offs2 = [pmax - pad2 + k * d2 for k in range(K)]
    uoffs = sorted(set(offs1) | set(offs2) | {pmax})
    T = len(uoffs)

    # Fused block weight (3F, T*C_in_pad): rows [0,F)=conv1, [F,2F)=conv2,
    # [2F,3F)=1x1 residual conv (lives in the slab's center tap, off == pmax).
    w1_by_off = {offs1[k]: params["conv1_w"][:, :, k] for k in range(K)}
    w2_by_off = {offs2[k]: params["conv2_w"][:, :, k] for k in range(K)}
    zeros_fc = jnp.zeros((F, C_in), jnp.float32)
    blocks = []
    for o in uoffs:
        blk = jnp.concatenate(
            [w1_by_off.get(o, zeros_fc),
             w2_by_off.get(o, zeros_fc),
             params["res_w"] if o == pmax else zeros_fc], axis=0)  # (3F, C_in)
        blocks.append(jnp.pad(blk, ((0, 0), (0, C_in_pad - C_in))))
    wbig = jnp.concatenate(blocks, axis=1)            # (3F, T*C_in_pad)

    # Fused bias (3F, 1) / final bias (F, 1): broadcast over lanes, kept f32.
    bbig = jnp.concatenate([params["conv1_b"], params["conv2_b"],
                            params["res_b"]]).reshape(3 * F, 1)
    bf = params["final_b"].reshape(F, 1)
    wf = params["final_w"]                            # (F, 2F)

    if use_bf16:
        # Cast matmul weights once here (not per grid step in the kernel).
        wbig = wbig.astype(jnp.bfloat16)
        wf = wf.astype(jnp.bfloat16)

    # Batch-group grid: a "parallel" axis with >=2 steps (when N allows) so
    # both v7x TensorCores get work, while keeping each step's lane slab as
    # wide as possible (>=512 lanes once there are enough batches).  The
    # multi-step grid also lets BlockSpec pipelining overlap DMA with compute.
    if batch_block is None:
        batch_block = 1
        while (batch_block * Lp < 512
               and N % (batch_block * 2) == 0
               and N // (batch_block * 2) >= 2):
            batch_block *= 2
    assert N % batch_block == 0
    NB = batch_block
    n_steps = N // NB
    lanes = NB * Lp

    slab_dtype = jnp.bfloat16 if use_bf16 else jnp.float32
    kernel = functools.partial(
        _resblock_kernel, uoffs=tuple(uoffs), NB=NB, L=L, Lp=Lp, F=F,
        C_in_pad=C_in_pad, use_bf16=use_bf16,
        roll_numpy=_roll_is_numpy_convention())

    full = lambda a: pl.BlockSpec(a.shape, lambda i: (0,) * a.ndim)

    # NOTE: if L is ever not a multiple of 128, switch the outputs to a single
    # lane-dense (F, N*L) slab to keep stores unmasked.  When scaling to
    # production L/F (e.g. v7x's 64 MiB VMEM), tile L with a pmax halo here.
    out_sum, out = pl.pallas_call(
        kernel,
        out_shape=(jax.ShapeDtypeStruct((N, F, L), jnp.float32),
                   jax.ShapeDtypeStruct((N, F, L), jnp.float32)),
        grid_spec=pltpu.PrefetchScalarGridSpec(
            num_scalar_prefetch=0,
            grid=(n_steps,),
            in_specs=[
                pl.BlockSpec((C_in_pad, lanes), lambda i: (0, i)),
                full(wbig), full(bbig), full(wf), full(bf),
            ],
            out_specs=[
                pl.BlockSpec((NB, F, L), lambda i: (i, 0, 0)),
                pl.BlockSpec((NB, F, L), lambda i: (i, 0, 0)),
            ],
            scratch_shapes=[pltpu.VMEM((T * C_in_pad, lanes), slab_dtype)],
        ),
        compiler_params=pltpu.CompilerParams(
            dimension_semantics=("parallel",)),
    )(x2d, wbig, bbig, wf, bf)
    return out_sum, out


# ------------------------- pure-JAX reference -------------------------
def _conv1d_same_ref(x, w, b, dilation):
    out = jax.lax.conv_general_dilated(
        x, w, window_strides=(1,), padding="SAME",
        rhs_dilation=(dilation,),
        dimension_numbers=("NCH", "OIH", "NCH"))
    return out + b[None, :, None]


def residual_block_ref(x, params, *, kernel_size, dilation):
    x_res = _conv1d_same_ref(x, params["res_w"][:, :, None],
                             params["res_b"], 1)
    x1 = _conv1d_same_ref(x, params["conv1_w"], params["conv1_b"], dilation)
    x2 = _conv1d_same_ref(x, params["conv2_w"], params["conv2_b"],
                          dilation * 2)
    cat = jnp.concatenate([x1, x2], axis=1)
    act = jax.nn.elu(cat)
    out = _conv1d_same_ref(act, params["final_w"][:, :, None],
                           params["final_b"], 1)
    return out + x_res, out


if __name__ == "__main__":
    # module hyperparameters kept small: residual_block(i, in_channels=4,
    # num_filter=8, kernel_size=K, dropout=0.1); odd K matches padding='same'.
    N, C_in, F, L = 2, 4, 8, 128
    key = jax.random.PRNGKey(0)

    for (K, dilation_i) in [(3, 1), (5, 2)]:
        ks = jax.random.split(jax.random.fold_in(key, K), 9)
        params = {
            "res_w":   0.2 * jax.random.normal(ks[0], (F, C_in), jnp.float32),
            "res_b":   0.1 * jax.random.normal(ks[1], (F,), jnp.float32),
            "conv1_w": 0.2 * jax.random.normal(ks[2], (F, C_in, K), jnp.float32),
            "conv1_b": 0.1 * jax.random.normal(ks[3], (F,), jnp.float32),
            "conv2_w": 0.2 * jax.random.normal(ks[4], (F, C_in, K), jnp.float32),
            "conv2_b": 0.1 * jax.random.normal(ks[5], (F,), jnp.float32),
            "final_w": 0.2 * jax.random.normal(ks[6], (F, 2 * F), jnp.float32),
            "final_b": 0.1 * jax.random.normal(ks[7], (F,), jnp.float32),
        }
        x = jax.random.normal(ks[8], (N, C_in, L), jnp.float32)

        ref_sum, ref_out = residual_block_ref(x, params,
                                              kernel_size=K,
                                              dilation=dilation_i)

        # f32-operand path (tight tolerance)
        out_sum, out = residual_block_forward(x, params, kernel_size=K,
                                              dilation=dilation_i)
        jax.block_until_ready((out_sum, out))
        assert jnp.allclose(out_sum, ref_sum, atol=1e-3, rtol=1e-3)
        assert jnp.allclose(out, ref_out, atol=1e-3, rtol=1e-3)

        # bf16-operand path (native MXU dtype on v6e/v7x; f32 accumulation)
        out_sum_bf, out_bf = residual_block_forward(x, params, kernel_size=K,
                                                    dilation=dilation_i,
                                                    use_bf16=True)
        jax.block_until_ready((out_sum_bf, out_bf))
        assert jnp.allclose(out_sum_bf, ref_sum, atol=5e-2, rtol=5e-2)
        assert jnp.allclose(out_bf, ref_out, atol=5e-2, rtol=5e-2)

    print("KERNEL_OK")
</pallas_src>

<mosaic_0001>
module attributes {stable_mosaic.version = 11 : i64} {
  func.func @probe(%arg0: memref<8x256xf32, #tpu.memory_space<vmem>>, %arg1: memref<8x256xf32, #tpu.memory_space<vmem>>) attributes {dimension_semantics = [], scalar_prefetch = 0 : i64, scratch_operands = 0 : i64, tpu.core_type = #tpu.core_type<tc>} {
    %c0 = arith.constant 0 : index
    %c0_0 = arith.constant 0 : index
    %0 = vector.load %arg0[%c0, %c0_0] : memref<8x256xf32, #tpu.memory_space<vmem>>, vector<8x256xf32>
    %c1_i32 = arith.constant 1 : i32
    %1 = tpu.dynamic_rotate %0 by %c1_i32 dim 1 : vector<8x256xf32>, i32 -> vector<8x256xf32>
    %c0_1 = arith.constant 0 : index
    %c0_2 = arith.constant 0 : index
    %2 = vector.load %arg1[%c0_1, %c0_2] : memref<8x256xf32, #tpu.memory_space<vmem>>, vector<8x256xf32>
    tpu.vector_store %arg1[%c0_1, %c0_2], %1 {strides = array<i32>} : memref<8x256xf32, #tpu.memory_space<vmem>>, vector<8x256xf32>,
    return
  }
}

</mosaic_0001>

<bundles_post_ra>
// kernel: tpu_custom_call.1
= control target key start
LH: loop header
LB: loop body
LE: loop exit
PB: predicated region body
PF: predicated region fallthrough
CT: control target
= control target key end

     0   :  { %6 = vsyncpa [#allocation3], 0  ;;  %s137_s0 = inlined_call_operand.hbm [shape: f32[8,256], index: 0, kind: input, shape index: {}]   ;;  %s138_s1 = inlined_call_operand.hbm [shape: f32[8,256], index: 1, kind: output, shape index: {}]  }
   0x1   :  { %7 = vsyncpa [#allocation4], 0  ;;  %s100_s6 = smov [#allocation2]   ;;  %s52_s10 = scalar_lea.hbm %s137_s0, 256 }
   0x2   :  { %s14_s7 = sshll.u32 %s100_s6, 4  ;;  %p53_p0 = scmp.ne.s32.totalorder %s137_s0, %s52_s10  ;;  %s15_s7 = int_to_ptr.vmem [resolvable:$true] %s14_s7 }
   0x3   :  { %p56_p1 = scmp.lt.u32.totalorder %s52_s10, %s137_s0 }
   0x5   :  { %p58_p2 = pnand %p56_p1, %p53_p0 }
   0x7   :  { %61 = shalt.err (!%p58_p2)
}
   0x8   :  { %s62_s15 = scalar_lea.vmem %s15_s7, 256  ;;  %p67_p4 = scmp.lt.s32.totalorder %s15_s7, %s15_s7 }
   0x9   :  { %p63_p3 = scmp.ne.s32.totalorder %s15_s7, %s62_s15  ;;  %p68_p5 = scmp.lt.s32.totalorder %s62_s15, %s62_s15 }
   0xb   :  { %p69_p6 = por %p68_p5, %p67_p4 }
   0xd   :  { %p70_p7 = pnand %p69_p6, %p63_p3 }
   0xf   :  { %73 = shalt.err (!%p70_p7)
}
  0x10   :  { %17 = dma.hbm_to_vmem [thread:$0]  %s137_s0, 256, %s15_s7, [#allocation3]  }
  0x11   :  { %96 = dma.done.wait [#allocation3], 256  }
  0x12   :  { %97 = vsyncadd [#allocation3], 4294967040  ;;  %v21_v0 = vld [vmem:[#allocation2] sm:$0xff]  ;;  %s101_s18 = smov 1   ;;  %v22_v1 = vld [vmem:[#allocation2 + $0x8] sm:$0xff]  ;;  %v27_v2 = vlaneseq  ;;  %s102_s19 = smov [#allocation5]  }
  0x13   :  { %23 = vrot.lane.b32.xlu0 %v21_v0, %s101_s18  ;;  %s40_s20 = sshll.u32 %s102_s19, 4  ;;  %s41_s20 = int_to_ptr.vmem [resolvable:$true] %s40_s20 }
  0x14   :  { %v28_v3 = vand.u32 127, %v27_v2  ;;  %s74_s0 = scalar_lea.vmem %s41_s20, 256  ;;  %p79_p9 = scmp.lt.s32.totalorder %s41_s20, %s41_s20 }
  0x15   :  { %p75_p8 = scmp.ne.s32.totalorder %s41_s20, %s74_s0  ;;  %p80_p10 = scmp.lt.s32.totalorder %s74_s0, %s74_s0 }
  0x16   :  { %vm29_vm0 = vcmp.lt.s32.totalorder %v28_v3, 1 }
  0x17   :  { %25 = vrot.lane.b32.xlu0 %v22_v1, %s101_s18  ;;  %p81_p11 = por %p80_p10, %p79_p9 }
  0x19   :  { %p82_p12 = pnand %p81_p11, %p75_p8 }
  0x85   :  { %v24_v4 = vpop.permute.xlu0 %23 }
  0x89   :  { %v26_v5 = vpop.permute.xlu0 %25 }
  0x8a   :  { %v30_v6 = vsel %vm29_vm0, %v24_v4, %v26_v5  ;;  %v31_v7 = vsel %vm29_vm0, %v26_v5, %v24_v4 }
  0x8b   :  { %32 = vst [vmem:[#allocation5] sm:$0xff] %v31_v7  ;;  %33 = vst [vmem:[#allocation5 + $0x8] sm:$0xff] %v30_v6 }
  0x8c   :  { %85 = shalt.err (!%p82_p12)
}
  0x8d   :  { %s86_s23 = scalar_lea.hbm %s138_s1, 256 }
  0x8e   :  { %p87_p13 = scmp.ne.s32.totalorder %s138_s1, %s86_s23  ;;  %p90_p0 = scmp.lt.u32.totalorder %s86_s23, %s138_s1 }
  0x90   :  { %p92_p1 = pnand %p90_p0, %p87_p13 }
  0x92   :  { %95 = shalt.err (!%p92_p1)
}
  0x93   :  { %43 = dma.vmem_to_hbm [thread:$0]  %s41_s20, 256, %s138_s1, [#allocation4]  }
  0x94   :  { %98 = dma.done.wait [#allocation4], 256  }
  0x95   :  { %99 = vsyncadd [#allocation4], 4294967040 }
  0x96   :  { %47 = vsyncpa [#allocation3], 1 }
  0x97   :  { %48 = vsyncpa [#allocation4], 1 }

</bundles_post_ra>
